<compile_context>
chip_gen: v6e
topology: v6e:2x2x1
jax: 0.10.0
libtpu: 0.0.40
codegen_flags: <defaults>
</compile_context>

<pallas_src>
import math

import jax
import jax.numpy as jnp
from jax.experimental import pallas as pl
from jax.experimental.pallas import tpu as pltpu


HIDDEN = 64        # PyTorch hidden width
HIDDEN_PAD = 128   # lane-dense padded hidden width used inside the kernel


def _round_up(x, m):
    return (x + m - 1) // m * m


def actor_mlp_kernel(
    x_ref,    # (tb, D)          f32
    w1_ref,   # (D, 128)         compute dtype
    b1_ref,   # (1, 128)         f32
    w2_ref,   # (128, 128)       compute dtype
    b2_ref,   # (1, 128)         f32
    w3_ref,   # (128, 128)       compute dtype
    b3_ref,   # (1, 128)         f32
    w4_ref,   # (128, n_actions) compute dtype
    b4_ref,   # (1, n_actions)   f32
    out_ref,  # (tb, n_actions)  f32
):
    f32 = jnp.float32
    cdt = w1_ref.dtype  # MXU operand dtype (bf16 in production, f32 for exact test)

    x = x_ref[...].astype(cdt)
    # own_fc: Linear + ReLU
    h = jnp.maximum(
        jnp.dot(x, w1_ref[...], preferred_element_type=f32) + b1_ref[...], 0.0)
    # own_fc_lay2: (Linear + ReLU) x 2
    h = jnp.maximum(
        jnp.dot(h.astype(cdt), w2_ref[...], preferred_element_type=f32) + b2_ref[...], 0.0)
    h = jnp.maximum(
        jnp.dot(h.astype(cdt), w3_ref[...], preferred_element_type=f32) + b3_ref[...], 0.0)
    # own_fc_outlay: Linear + Tanh
    out = jnp.tanh(
        jnp.dot(h.astype(cdt), w4_ref[...], preferred_element_type=f32) + b4_ref[...])
    out_ref[...] = out.astype(out_ref.dtype)


def init_linear(key, fan_in, fan_out):
    """PyTorch nn.Linear default init: U(-1/sqrt(fan_in), 1/sqrt(fan_in)).
    Weight stored transposed (fan_in, fan_out); bias (1, fan_out)."""
    k1, k2 = jax.random.split(key)
    bound = 1.0 / math.sqrt(fan_in)
    w = jax.random.uniform(k1, (fan_in, fan_out), jnp.float32, -bound, bound)
    b = jax.random.uniform(k2, (1, fan_out), jnp.float32, -bound, bound)
    return w, b


def make_params(actor_dim, n_actions, seed=0):
    keys = jax.random.split(jax.random.PRNGKey(seed), 4)
    w1, b1 = init_linear(keys[0], actor_dim[0], HIDDEN)
    w2, b2 = init_linear(keys[1], HIDDEN, HIDDEN)
    w3, b3 = init_linear(keys[2], HIDDEN, HIDDEN)
    w4, b4 = init_linear(keys[3], HIDDEN, n_actions)
    return dict(w1=w1, b1=b1, w2=w2, b2=b2, w3=w3, b3=b3, w4=w4, b4=b4)


def prepare_kernel_params(params, compute_dtype=jnp.bfloat16):
    """One-time weight prep: zero-pad hidden 64->128 (lane-dense VPU ops,
    bit-identical math) and cast matmul weights to the MXU operand dtype.
    Biases stay f32 (bias-add / ReLU / tanh run in f32)."""
    hp = HIDDEN_PAD - HIDDEN
    return dict(
        w1=jnp.pad(params["w1"], ((0, 0), (0, hp))).astype(compute_dtype),
        b1=jnp.pad(params["b1"], ((0, 0), (0, hp))),
        w2=jnp.pad(params["w2"], ((0, hp), (0, hp))).astype(compute_dtype),
        b2=jnp.pad(params["b2"], ((0, 0), (0, hp))),
        w3=jnp.pad(params["w3"], ((0, hp), (0, hp))).astype(compute_dtype),
        b3=jnp.pad(params["b3"], ((0, 0), (0, hp))),
        w4=jnp.pad(params["w4"], ((0, hp), (0, 0))).astype(compute_dtype),
        b4=params["b4"],
    )


def actor_forward(state, kparams, *, block_b=1024):
    """Pallas forward. `state` may be the own-obs tensor or a sequence
    (the PyTorch forward indexes state[0])."""
    x = state[0] if isinstance(state, (list, tuple)) else state
    x = jnp.asarray(x, jnp.float32)
    B, D = x.shape
    n_actions = kparams["w4"].shape[1]

    # Large batch tile (amortize ~0.35us/grid-step), multiple of 8 (sublane),
    # capped at ceil(B/2) so the grid has >= 2 steps for v7x's 2 TensorCores.
    tb = max(8, min(_round_up(block_b, 8), _round_up(pl.cdiv(B, 2), 8)))
    grid = (pl.cdiv(B, tb),)  # partial last block is masked by Pallas

    def wspec(arr):  # full-array block, constant index map -> VMEM-resident
        return pl.BlockSpec(arr.shape, lambda i: (0, 0))

    in_specs = [
        pl.BlockSpec((tb, D), lambda i: (i, 0)),
        wspec(kparams["w1"]), wspec(kparams["b1"]),
        wspec(kparams["w2"]), wspec(kparams["b2"]),
        wspec(kparams["w3"]), wspec(kparams["b3"]),
        wspec(kparams["w4"]), wspec(kparams["b4"]),
    ]
    out_specs = pl.BlockSpec((tb, n_actions), lambda i: (i, 0))

    return pl.pallas_call(
        actor_mlp_kernel,
        out_shape=jax.ShapeDtypeStruct((B, n_actions), jnp.float32),
        grid=grid,
        in_specs=in_specs,
        out_specs=out_specs,
        compiler_params=pltpu.CompilerParams(
            dimension_semantics=("parallel",),
        ),
    )(
        x,
        kparams["w1"], kparams["b1"],
        kparams["w2"], kparams["b2"],
        kparams["w3"], kparams["b3"],
        kparams["w4"], kparams["b4"],
    )


def actor_reference(x, params):
    """Pure-JAX reference mirroring the PyTorch forward (unpadded, f32)."""
    h = jax.nn.relu(x @ params["w1"] + params["b1"])
    h = jax.nn.relu(h @ params["w2"] + params["b2"])
    h = jax.nn.relu(h @ params["w3"] + params["b3"])
    return jnp.tanh(h @ params["w4"] + params["b4"])


if __name__ == "__main__":
    # Small, forward-consistent shapes: actor_dim = (8, 8) (only [0] used), 2 actions.
    B = 2
    actor_dim = (8, 8)
    n_actions = 2

    params = make_params(actor_dim, n_actions, seed=0)

    obs = jax.random.normal(jax.random.PRNGKey(0), (B, actor_dim[0]), jnp.float32)
    state = (obs,)  # PyTorch forward uses state[0]

    ref = actor_reference(obs, params)

    # Exact check: f32 MXU operands (hidden padding is bit-identical in f32).
    out_f32 = jax.block_until_ready(
        actor_forward(state, prepare_kernel_params(params, jnp.float32)))
    assert out_f32.shape == (B, n_actions), out_f32.shape
    assert jnp.allclose(out_f32, ref, atol=2e-5, rtol=2e-5), (out_f32, ref)

    # Production config on v6e/v7x: bf16 MXU operands, f32 accumulation.
    out_bf16 = jax.block_until_ready(
        actor_forward(state, prepare_kernel_params(params, jnp.bfloat16)))
    assert out_bf16.shape == (B, n_actions), out_bf16.shape
    assert jnp.allclose(out_bf16, ref, atol=5e-2, rtol=5e-2), (out_bf16, ref)

    print("KERNEL_OK")
</pallas_src>

<mosaic_0001>
module attributes {stable_mosaic.version = 11 : i64} {
  func.func @actor_mlp_kernel(%arg0: i32, %arg1: memref<8x8xf32, #tpu.memory_space<vmem>>, %arg2: memref<8x128xf32, #tpu.memory_space<vmem>>, %arg3: memref<1x128xf32, #tpu.memory_space<vmem>>, %arg4: memref<128x128xf32, #tpu.memory_space<vmem>>, %arg5: memref<1x128xf32, #tpu.memory_space<vmem>>, %arg6: memref<128x128xf32, #tpu.memory_space<vmem>>, %arg7: memref<1x128xf32, #tpu.memory_space<vmem>>, %arg8: memref<128x2xf32, #tpu.memory_space<vmem>>, %arg9: memref<1x2xf32, #tpu.memory_space<vmem>>, %arg10: memref<8x2xf32, #tpu.memory_space<vmem>>) attributes {dimension_semantics = [#tpu.dimension_semantics<parallel>], iteration_bounds = array<i64: 1>, scalar_prefetch = 0 : i64, scratch_operands = 0 : i64, tpu.core_type = #tpu.core_type<tc>, window_params = [{transform_indices = @transform_0, window_bounds = array<i64: 8, 8>}, {pipeline_mode = #tpu.pipeline_mode<synchronous>, transform_indices = @transform_1, window_bounds = array<i64: 8, 128>}, {pipeline_mode = #tpu.pipeline_mode<synchronous>, transform_indices = @transform_2, window_bounds = array<i64: 1, 128>}, {pipeline_mode = #tpu.pipeline_mode<synchronous>, transform_indices = @transform_3, window_bounds = array<i64: 128, 128>}, {pipeline_mode = #tpu.pipeline_mode<synchronous>, transform_indices = @transform_4, window_bounds = array<i64: 1, 128>}, {pipeline_mode = #tpu.pipeline_mode<synchronous>, transform_indices = @transform_5, window_bounds = array<i64: 128, 128>}, {pipeline_mode = #tpu.pipeline_mode<synchronous>, transform_indices = @transform_6, window_bounds = array<i64: 1, 128>}, {pipeline_mode = #tpu.pipeline_mode<synchronous>, transform_indices = @transform_7, window_bounds = array<i64: 128, 2>}, {pipeline_mode = #tpu.pipeline_mode<synchronous>, transform_indices = @transform_8, window_bounds = array<i64: 1, 2>}, {transform_indices = @transform_9, window_bounds = array<i64: 8, 2>}]} {
    %c0 = arith.constant 0 : index
    %c0_0 = arith.constant 0 : index
    %0 = vector.load %arg1[%c0, %c0_0] : memref<8x8xf32, #tpu.memory_space<vmem>>, vector<8x8xf32>
    %c0_1 = arith.constant 0 : index
    %c0_2 = arith.constant 0 : index
    %1 = vector.load %arg2[%c0_1, %c0_2] : memref<8x128xf32, #tpu.memory_space<vmem>>, vector<8x128xf32>
    %cst = arith.constant dense<0.000000e+00> : vector<8x128xf32>
    %2 = tpu.matmul %0, %1, %cst {dimension_numbers = #tpu.dot_dimension_numbers<[1], [0], [0], [1], [0, 0, 1, 1], [], []>} : vector<8x8xf32>, vector<8x128xf32>, vector<8x128xf32> -> vector<8x128xf32>
    %c0_3 = arith.constant 0 : index
    %c0_4 = arith.constant 0 : index
    %3 = vector.load %arg3[%c0_3, %c0_4] : memref<1x128xf32, #tpu.memory_space<vmem>>, vector<1x128xf32>
    %4 = vector.broadcast %3 : vector<1x128xf32> to vector<8x128xf32>
    %5 = arith.addf %2, %4 : vector<8x128xf32>
    %cst_5 = arith.constant 0.000000e+00 : f32
    %6 = vector.broadcast %cst_5 : f32 to vector<8x128xf32>
    %7 = arith.maximumf %5, %6 : vector<8x128xf32>
    %c0_6 = arith.constant 0 : index
    %c0_7 = arith.constant 0 : index
    %8 = vector.load %arg4[%c0_6, %c0_7] : memref<128x128xf32, #tpu.memory_space<vmem>>, vector<128x128xf32>
    %cst_8 = arith.constant dense<0.000000e+00> : vector<8x128xf32>
    %9 = tpu.matmul %7, %8, %cst_8 {dimension_numbers = #tpu.dot_dimension_numbers<[1], [0], [0], [1], [0, 0, 1, 1], [], []>} : vector<8x128xf32>, vector<128x128xf32>, vector<8x128xf32> -> vector<8x128xf32>
    %c0_9 = arith.constant 0 : index
    %c0_10 = arith.constant 0 : index
    %10 = vector.load %arg5[%c0_9, %c0_10] : memref<1x128xf32, #tpu.memory_space<vmem>>, vector<1x128xf32>
    %11 = vector.broadcast %10 : vector<1x128xf32> to vector<8x128xf32>
    %12 = arith.addf %9, %11 : vector<8x128xf32>
    %cst_11 = arith.constant 0.000000e+00 : f32
    %13 = vector.broadcast %cst_11 : f32 to vector<8x128xf32>
    %14 = arith.maximumf %12, %13 : vector<8x128xf32>
    %c0_12 = arith.constant 0 : index
    %c0_13 = arith.constant 0 : index
    %15 = vector.load %arg6[%c0_12, %c0_13] : memref<128x128xf32, #tpu.memory_space<vmem>>, vector<128x128xf32>
    %cst_14 = arith.constant dense<0.000000e+00> : vector<8x128xf32>
    %16 = tpu.matmul %14, %15, %cst_14 {dimension_numbers = #tpu.dot_dimension_numbers<[1], [0], [0], [1], [0, 0, 1, 1], [], []>} : vector<8x128xf32>, vector<128x128xf32>, vector<8x128xf32> -> vector<8x128xf32>
    %c0_15 = arith.constant 0 : index
    %c0_16 = arith.constant 0 : index
    %17 = vector.load %arg7[%c0_15, %c0_16] : memref<1x128xf32, #tpu.memory_space<vmem>>, vector<1x128xf32>
    %18 = vector.broadcast %17 : vector<1x128xf32> to vector<8x128xf32>
    %19 = arith.addf %16, %18 : vector<8x128xf32>
    %cst_17 = arith.constant 0.000000e+00 : f32
    %20 = vector.broadcast %cst_17 : f32 to vector<8x128xf32>
    %21 = arith.maximumf %19, %20 : vector<8x128xf32>
    %c0_18 = arith.constant 0 : index
    %c0_19 = arith.constant 0 : index
    %22 = vector.load %arg8[%c0_18, %c0_19] : memref<128x2xf32, #tpu.memory_space<vmem>>, vector<128x2xf32>
    %cst_20 = arith.constant dense<0.000000e+00> : vector<8x2xf32>
    %23 = tpu.matmul %21, %22, %cst_20 {dimension_numbers = #tpu.dot_dimension_numbers<[1], [0], [0], [1], [0, 0, 1, 1], [], []>} : vector<8x128xf32>, vector<128x2xf32>, vector<8x2xf32> -> vector<8x2xf32>
    %c0_21 = arith.constant 0 : index
    %c0_22 = arith.constant 0 : index
    %24 = vector.load %arg9[%c0_21, %c0_22] : memref<1x2xf32, #tpu.memory_space<vmem>>, vector<1x2xf32>
    %25 = vector.broadcast %24 : vector<1x2xf32> to vector<8x2xf32>
    %26 = arith.addf %23, %25 : vector<8x2xf32>
    %27 = math.tanh %26 : vector<8x2xf32>
    %c0_23 = arith.constant 0 : index
    %c0_24 = arith.constant 0 : index
    %28 = vector.load %arg10[%c0_23, %c0_24] : memref<8x2xf32, #tpu.memory_space<vmem>>, vector<8x2xf32>
    tpu.vector_store %arg10[%c0_23, %c0_24], %27 {strides = array<i32>} : memref<8x2xf32, #tpu.memory_space<vmem>>, vector<8x2xf32>,
    return
  }
  func.func @transform_0(%arg0: i32) -> (i32, i32) {
    %c0_i32 = arith.constant 0 : i32
    %c0_i32_0 = arith.constant 0 : i32
    return %arg0, %c0_i32 : i32, i32
  }
  func.func @transform_1(%arg0: i32) -> (i32, i32) {
    %c0_i32 = arith.constant 0 : i32
    %c0_i32_0 = arith.constant 0 : i32
    %c0_i32_1 = arith.constant 0 : i32
    return %c0_i32, %c0_i32_0 : i32, i32
  }
  func.func @transform_2(%arg0: i32) -> (i32, i32) {
    %c0_i32 = arith.constant 0 : i32
    %c0_i32_0 = arith.constant 0 : i32
    %c0_i32_1 = arith.constant 0 : i32
    return %c0_i32, %c0_i32_0 : i32, i32
  }
  func.func @transform_3(%arg0: i32) -> (i32, i32) {
    %c0_i32 = arith.constant 0 : i32
    %c0_i32_0 = arith.constant 0 : i32
    %c0_i32_1 = arith.constant 0 : i32
    return %c0_i32, %c0_i32_0 : i32, i32
  }
  func.func @transform_4(%arg0: i32) -> (i32, i32) {
    %c0_i32 = arith.constant 0 : i32
    %c0_i32_0 = arith.constant 0 : i32
    %c0_i32_1 = arith.constant 0 : i32
    return %c0_i32, %c0_i32_0 : i32, i32
  }
  func.func @transform_5(%arg0: i32) -> (i32, i32) {
    %c0_i32 = arith.constant 0 : i32
    %c0_i32_0 = arith.constant 0 : i32
    %c0_i32_1 = arith.constant 0 : i32
    return %c0_i32, %c0_i32_0 : i32, i32
  }
  func.func @transform_6(%arg0: i32) -> (i32, i32) {
    %c0_i32 = arith.constant 0 : i32
    %c0_i32_0 = arith.constant 0 : i32
    %c0_i32_1 = arith.constant 0 : i32
    return %c0_i32, %c0_i32_0 : i32, i32
  }
  func.func @transform_7(%arg0: i32) -> (i32, i32) {
    %c0_i32 = arith.constant 0 : i32
    %c0_i32_0 = arith.constant 0 : i32
    %c0_i32_1 = arith.constant 0 : i32
    return %c0_i32, %c0_i32_0 : i32, i32
  }
  func.func @transform_8(%arg0: i32) -> (i32, i32) {
    %c0_i32 = arith.constant 0 : i32
    %c0_i32_0 = arith.constant 0 : i32
    %c0_i32_1 = arith.constant 0 : i32
    return %c0_i32, %c0_i32_0 : i32, i32
  }
  func.func @transform_9(%arg0: i32) -> (i32, i32) {
    %c0_i32 = arith.constant 0 : i32
    %c0_i32_0 = arith.constant 0 : i32
    return %arg0, %c0_i32 : i32, i32
  }
}

</mosaic_0001>

<bundles_post_ra>
// kernel: tpu_custom_call.1
= control target key start
LH: loop header
LB: loop body
LE: loop exit
PB: predicated region body
PF: predicated region fallthrough
CT: control target
= control target key end

     0   :  { %14 = vsyncpa [#allocation3], 0  ;;  %s926_s0 = inlined_call_operand.vmem [shape: f32[2,8], index: 0, kind: input, shape index: {}]   ;;  %s927_s1 = inlined_call_operand.hbm [shape: f32[8,128], index: 1, kind: input, shape index: {}]   ;;  %s928_s2 = inlined_call_operand.vmem [shape: f32[1,128], index: 2, kind: input, shape index: {}]   ;;  %s929_s3 = inlined_call_operand.vmem [shape: f32[128,128], index: 3, kind: input, shape index: {}]   ;;  %s930_s4 = inlined_call_operand.vmem [shape: f32[1,128], index: 4, kind: input, shape index: {}]   ;;  %s931_s5 = inlined_call_operand.hbm [shape: f32[128,128], index: 5, kind: input, shape index: {}]   ;;  %s932_s6 = inlined_call_operand.vmem [shape: f32[1,128], index: 6, kind: input, shape index: {}]   ;;  %s933_s7 = inlined_call_operand.vmem [shape: f32[128,2], index: 7, kind: input, shape index: {}]   ;;  %s934_s8 = inlined_call_operand.vmem [shape: f32[1,2], index: 8, kind: input, shape index: {}]   ;;  %s935_s9 = inlined_call_operand.hbm [shape: f32[2,2], index: 9, kind: output, shape index: {}]  }
   0x1   :  { %15 = vsyncpa [#allocation6], 0 }
   0x2   :  { %16 = vsyncpa [#allocation4], 0  ;;  %s690_s30 = smov [#allocation2]   ;;  %s691_s11 = smov [#allocation5]  }
   0x3   :  { %s25_s10 = sshll.u32 %s690_s30, 4  ;;  %s40_s12 = sshll.u32 %s691_s11, 4  ;;  %s26_s10 = int_to_ptr.vmem [resolvable:$true] %s25_s10  ;;  %s41_s12 = int_to_ptr.vmem [resolvable:$true] %s40_s12 }
   0x4   :  { %s632_s13 = scalar_lea.vmem %s26_s10, 128  ;;  %p637_p1 = scmp.lt.s32.totalorder %s26_s10, %s26_s10 }
   0x5   :  { %p633_p0 = scmp.ne.s32.totalorder %s26_s10, %s632_s13  ;;  %p638_p2 = scmp.lt.s32.totalorder %s632_s13, %s632_s13 }
   0x7   :  { %p639_p3 = por %p638_p2, %p637_p1 }
   0x9   :  { %p640_p4 = pnand %p639_p3, %p633_p0 }
   0xb   :  { %643 = shalt.err (!%p640_p4)
}
   0xc   :  { %28 = dma.hbm_to_vmem [thread:$0]  %s927_s1, 128, %s26_s10, [#allocation3]  }
   0xd   :  { %s652_s16 = scalar_lea.vmem %s41_s12, 2048  ;;  %p657_p6 = scmp.lt.s32.totalorder %s41_s12, %s41_s12 }
   0xe   :  { %p653_p5 = scmp.ne.s32.totalorder %s41_s12, %s652_s16  ;;  %p658_p7 = scmp.lt.s32.totalorder %s652_s16, %s652_s16 }
  0x10   :  { %p659_p8 = por %p658_p7, %p657_p6 }
  0x12   :  { %p660_p9 = pnand %p659_p8, %p653_p5 }
  0x14   :  { %663 = shalt.err (!%p660_p9)
}
  0x15   :  { %s692_s17 = smov 128   ;;  %s693_s18 = smov 8  }
  0x16   :  { %46 = dma.hbm_to_vmem [thread:$0]  %s931_s5, 2048, %s41_s12, [#allocation6], %s692_s17, %s692_s17, %s693_s18  }
  0x17   :  { %684 = dma.done.wait [#allocation3], 128  }
  0x18   :  { %685 = vsyncadd [#allocation3], 4294967168 }
  0x19   :  { %686 = dma.done.wait [#allocation6], 2048  }
  0x1a   :  { %687 = vsyncadd [#allocation6], 4294965248  ;;  %v694_v0 = vmov 0.0   ;;  %vm695_vm0 = vmmov 0   ;;  %vm68_vm1 = vcmask 64512   ;;  %v60_v1 = vld [vmem:[#allocation2] sm:$0xff] }
  0x1b   :  { %503 = vmatprep.subr.mxu0 %v694_v0  ;;  %505 = vmatprep.mubr.msk.f32.mxu0 %vm695_vm0, %v694_v0  ;;  %v59_v2 = vld [vmem:[%s926_s0] sm:$0xff]  ;;  %v158_v3 = vld [vmem:[%s929_s3 + $0x78] sm:$0xff]  ;;  %v157_v4 = vld [vmem:[%s929_s3 + $0x70] sm:$0xff]  ;;  %vm425_vm2 = vcmask 15360  }
  0x1c   :  { %508 = vmatprep.subr.mxu1 %v694_v0  ;;  %540 = vmatprep.mubr.msk.f32.mxu1 %vm695_vm0, %v694_v0  ;;  %v156_v5 = vld [vmem:[%s929_s3 + $0x68] sm:$0xff]  ;;  %v155_v6 = vld [vmem:[%s929_s3 + $0x60] sm:$0xff]  ;;  %v154_v7 = vld [vmem:[%s929_s3 + $0x58] sm:$0xff] }
  0x1d   :  { %504 = vmatpush3.msra.mxu0 %v60_v1  ;;  %509 = vmatpush3.msra.mxu1 %v158_v3  ;;  %v153_v8 = vld [vmem:[%s929_s3 + $0x50] sm:$0xff]  ;;  %v152_v9 = vld [vmem:[%s929_s3 + $0x48] sm:$0xff]  ;;  %v151_v10 = vld [vmem:[%s929_s3 + $0x40] sm:$0xff] }
  0x1e   :  { %506 = vmatmul.mubr.msk.f32.vlgmr.msra.gmra.mxu0 %vm68_vm1, %v59_v2  ;;  %510 = vmatprep.subr.mxu1 %v694_v0  ;;  %v150_v11 = vld [vmem:[%s929_s3 + $0x38] sm:$0xff]  ;;  %v149_v12 = vld [vmem:[%s929_s3 + $0x30] sm:$0xff]  ;;  %v148_v13 = vld [vmem:[%s929_s3 + $0x28] sm:$0xff] }
  0x1f   :  { %511 = vmatpush3.msra.mxu1 %v157_v4  ;;  %543 = vmatprep.subr.mxu0 %v694_v0  ;;  %v147_v14 = vld [vmem:[%s929_s3 + $0x20] sm:$0xff]  ;;  %v146_v15 = vld [vmem:[%s929_s3 + $0x18] sm:$0xff]  ;;  %v145_v16 = vld [vmem:[%s929_s3 + $0x10] sm:$0xff] }
  0x20   :  { %512 = vmatprep.subr.mxu1 %v694_v0  ;;  %575 = vmatprep.mubr.msk.f32.mxu0 %vm695_vm0, %v694_v0  ;;  %v144_v17 = vld [vmem:[%s929_s3 + $0x8] sm:$0xff]  ;;  %v143_v18 = vld [vmem:[%s929_s3] sm:$0xff]  ;;  %v251_v20 = vld [vmem:[#allocation5 + $0x70] sm:$0xff] }
  0x21   :  { %513 = vmatpush3.msra.mxu1 %v156_v5  ;;  %v252_v19 = vld [vmem:[#allocation5 + $0x78] sm:$0xff]  ;;  %v250_v21 = vld [vmem:[#allocation5 + $0x68] sm:$0xff]  ;;  %v249_v22 = vld [vmem:[#allocation5 + $0x60] sm:$0xff] }
  0x22   :  { %514 = vmatprep.subr.mxu1 %v694_v0  ;;  %544 = vmatpush3.msra.mxu0 %v252_v19  ;;  %v248_v23 = vld [vmem:[#allocation5 + $0x58] sm:$0xff]  ;;  %v247_v24 = vld [vmem:[#allocation5 + $0x50] sm:$0xff]  ;;  %v246_v25 = vld [vmem:[#allocation5 + $0x48] sm:$0xff] }
  0x23   :  { %515 = vmatpush3.msra.mxu1 %v155_v6  ;;  %545 = vmatprep.subr.mxu0 %v694_v0  ;;  %v245_v26 = vld [vmem:[#allocation5 + $0x40] sm:$0xff]  ;;  %v244_v27 = vld [vmem:[#allocation5 + $0x38] sm:$0xff]  ;;  %v243_v28 = vld [vmem:[#allocation5 + $0x30] sm:$0xff] }
  0x24   :  { %516 = vmatprep.subr.mxu1 %v694_v0  ;;  %546 = vmatpush3.msra.mxu0 %v251_v20  ;;  %v242_v29 = vld [vmem:[#allocation5 + $0x28] sm:$0xff]  ;;  %v241_v30 = vld [vmem:[#allocation5 + $0x20] sm:$0xff]  ;;  %v240_v31 = vld [vmem:[#allocation5 + $0x18] sm:$0xff] }
  0x25   :  { %517 = vmatpush3.msra.mxu1 %v154_v7  ;;  %547 = vmatprep.subr.mxu0 %v694_v0  ;;  %v445_v32 = vld [vmem:[%s928_s2] ss:$0 sm:$0xff]  ;;  %v239_v37 = vld [vmem:[#allocation5 + $0x10] sm:$0xff]  ;;  %v238_v38 = vld [vmem:[#allocation5 + $0x8] sm:$0xff] }
  0x26   :  { %518 = vmatprep.subr.mxu1 %v694_v0  ;;  %548 = vmatpush3.msra.mxu0 %v250_v21  ;;  %v237_v39 = vld [vmem:[#allocation5] sm:$0xff]  ;;  %v346_v40 = vld [vmem:[%s933_s7 + $0x78] sm:$0xff]  ;;  %v345_v41 = vld [vmem:[%s933_s7 + $0x70] sm:$0xff] }
  0x27   :  { %519 = vmatpush3.msra.mxu1 %v153_v8  ;;  %549 = vmatprep.subr.mxu0 %v694_v0  ;;  %v344_v42 = vld [vmem:[%s933_s7 + $0x68] sm:$0xff]  ;;  %v343_v43 = vld [vmem:[%s933_s7 + $0x60] sm:$0xff]  ;;  %v342_v44 = vld [vmem:[%s933_s7 + $0x58] sm:$0xff] }
  0x28   :  { %520 = vmatprep.subr.mxu1 %v694_v0  ;;  %550 = vmatpush3.msra.mxu0 %v249_v22  ;;  %v341_v45 = vld [vmem:[%s933_s7 + $0x50] sm:$0xff]  ;;  %v340_v46 = vld [vmem:[%s933_s7 + $0x48] sm:$0xff]  ;;  %v339_v47 = vld [vmem:[%s933_s7 + $0x40] sm:$0xff] }
  0x29   :  { %521 = vmatpush3.msra.mxu1 %v152_v9  ;;  %551 = vmatprep.subr.mxu0 %v694_v0  ;;  %v338_v48 = vld [vmem:[%s933_s7 + $0x38] sm:$0xff]  ;;  %v337_v49 = vld [vmem:[%s933_s7 + $0x30] sm:$0xff]  ;;  %v336_v50 = vld [vmem:[%s933_s7 + $0x28] sm:$0xff] }
  0x2a   :  { %522 = vmatprep.subr.mxu1 %v694_v0  ;;  %552 = vmatpush3.msra.mxu0 %v248_v23  ;;  %v335_v51 = vld [vmem:[%s933_s7 + $0x20] sm:$0xff]  ;;  %v334_v52 = vld [vmem:[%s933_s7 + $0x18] sm:$0xff]  ;;  %v333_v58 = vld [vmem:[%s933_s7 + $0x10] sm:$0xff] }
  0x2b   :  { %523 = vmatpush3.msra.mxu1 %v151_v10  ;;  %553 = vmatprep.subr.mxu0 %v694_v0  ;;  %v447_v53 = vld [vmem:[%s930_s4] ss:$0 sm:$0xff]  ;;  %v332_v59 = vld [vmem:[%s933_s7 + $0x8] sm:$0xff] }
  0x2c   :  { %524 = vmatprep.subr.mxu1 %v694_v0  ;;  %554 = vmatpush3.msra.mxu0 %v247_v24  ;;  %v331_v60 = vld [vmem:[%s933_s7] sm:$0xff] }
  0x2d   :  { %525 = vmatpush3.msra.mxu1 %v150_v11  ;;  %555 = vmatprep.subr.mxu0 %v694_v0  ;;  %v448_v61 = vld [vmem:[%s932_s6] ss:$0 sm:$0xff] }
  0x2e   :  { %526 = vmatprep.subr.mxu1 %v694_v0  ;;  %556 = vmatpush3.msra.mxu0 %v246_v25  ;;  %v449_v3 = vld [vmem:[%s934_s8] ss:$0 sm:$0xff] }
  0x2f   :  { %527 = vmatpush3.msra.mxu1 %v149_v12  ;;  %557 = vmatprep.subr.mxu0 %v694_v0 }
  0x30   :  { %528 = vmatprep.subr.mxu1 %v694_v0  ;;  %558 = vmatpush3.msra.mxu0 %v245_v26 }
  0x31   :  { %529 = vmatpush3.msra.mxu1 %v148_v13  ;;  %559 = vmatprep.subr.mxu0 %v694_v0 }
  0x32   :  { %530 = vmatprep.subr.mxu1 %v694_v0  ;;  %560 = vmatpush3.msra.mxu0 %v244_v27 }
  0x33   :  { %531 = vmatpush3.msra.mxu1 %v147_v14  ;;  %561 = vmatprep.subr.mxu0 %v694_v0 }
  0x34   :  { %532 = vmatprep.subr.mxu1 %v694_v0  ;;  %562 = vmatpush3.msra.mxu0 %v243_v28 }
  0x35   :  { %533 = vmatpush3.msra.mxu1 %v146_v15  ;;  %563 = vmatprep.subr.mxu0 %v694_v0 }
  0x36   :  { %534 = vmatprep.subr.mxu1 %v694_v0  ;;  %564 = vmatpush3.msra.mxu0 %v242_v29 }
  0x37   :  { %535 = vmatpush3.msra.mxu1 %v145_v16  ;;  %565 = vmatprep.subr.mxu0 %v694_v0 }
  0x38   :  { %536 = vmatprep.subr.mxu1 %v694_v0  ;;  %566 = vmatpush3.msra.mxu0 %v241_v30 }
  0x39   :  { %537 = vmatpush3.msra.mxu1 %v144_v17  ;;  %567 = vmatprep.subr.mxu0 %v694_v0 }
  0x3a   :  { %538 = vmatprep.subr.mxu1 %v694_v0  ;;  %568 = vmatpush3.msra.mxu0 %v240_v31 }
  0x3b   :  { %539 = vmatpush3.msra.mxu1 %v143_v18  ;;  %569 = vmatprep.subr.mxu0 %v694_v0 }
  0x3c   :  { %578 = vmatprep.subr.mxu1 %v694_v0  ;;  %570 = vmatpush3.msra.mxu0 %v239_v37 }
  0x3d   :  { %571 = vmatprep.subr.mxu0 %v694_v0 }
  0x3e   :  { %572 = vmatpush3.msra.mxu0 %v238_v38 }
  0x3f   :  { %573 = vmatprep.subr.mxu0 %v694_v0 }
  0x40   :  { %574 = vmatpush3.msra.mxu0 %v237_v39 }
  0xde   :  { %v138_v33 = vpop.f32.mrf.mxu0 }
  0xdf   :  { %v139_v34 = vadd.f32 %v445_v32, %v138_v33 }
  0xe0   :  { %v507_v35 = vpop.f32.mrf.mxu0 }
  0xe1   :  { %v142_v36 = vmax.f32 %v139_v34, 0.0 }
  0xe3   :  { %541 = vmatmul.mubr.f32.vlgmr.msra.gmra.mxu1 %v142_v36 }
  0xe4   :  { %610 = vmatprep.mubr.msk.f32.mxu1 %vm695_vm0, %v694_v0  ;;  %579 = vmatpush3.msra.mxu1 %v346_v40 }
  0xe5   :  { %580 = vmatprep.subr.mxu1 %v694_v0 }
  0xe6   :  { %581 = vmatpush3.msra.mxu1 %v345_v41 }
  0xe7   :  { %582 = vmatprep.subr.mxu1 %v694_v0 }
  0xe8   :  { %583 = vmatpush3.msra.mxu1 %v344_v42 }
  0xe9   :  { %584 = vmatprep.subr.mxu1 %v694_v0 }
  0xea   :  { %585 = vmatpush3.msra.mxu1 %v343_v43 }
  0xeb   :  { %586 = vmatprep.subr.mxu1 %v694_v0 }
  0xec   :  { %587 = vmatpush3.msra.mxu1 %v342_v44 }
  0xed   :  { %588 = vmatprep.subr.mxu1 %v694_v0 }
  0xee   :  { %589 = vmatpush3.msra.mxu1 %v341_v45 }
  0xef   :  { %590 = vmatprep.subr.mxu1 %v694_v0 }
  0xf0   :  { %591 = vmatpush3.msra.mxu1 %v340_v46 }
  0xf1   :  { %592 = vmatprep.subr.mxu1 %v694_v0 }
  0xf2   :  { %593 = vmatpush3.msra.mxu1 %v339_v47 }
  0xf3   :  { %594 = vmatprep.subr.mxu1 %v694_v0 }
  0xf4   :  { %595 = vmatpush3.msra.mxu1 %v338_v48 }
  0xf5   :  { %596 = vmatprep.subr.mxu1 %v694_v0 }
  0xf6   :  { %597 = vmatpush3.msra.mxu1 %v337_v49 }
  0xf7   :  { %598 = vmatprep.subr.mxu1 %v694_v0 }
  0xf8   :  { %599 = vmatpush3.msra.mxu1 %v336_v50 }
  0xf9   :  { %600 = vmatprep.subr.mxu1 %v694_v0 }
  0xfa   :  { %601 = vmatpush3.msra.mxu1 %v335_v51 }
  0xfb   :  { %602 = vmatprep.subr.mxu1 %v694_v0 }
  0xfc   :  { %603 = vmatpush3.msra.mxu1 %v334_v52 }
  0xfd   :  { %604 = vmatprep.subr.mxu1 %v694_v0 }
  0xfe   :  { %605 = vmatpush3.msra.mxu1 %v333_v58 }
  0xff   :  { %606 = vmatprep.subr.mxu1 %v694_v0 }
 0x100   :  { %607 = vmatpush3.msra.mxu1 %v332_v59 }
 0x101   :  { %608 = vmatprep.subr.mxu1 %v694_v0 }
 0x102   :  { %609 = vmatpush3.msra.mxu1 %v331_v60 }
 0x1a3   :  { %v232_v54 = vpop.f32.mrf.mxu1 }
 0x1a4   :  { %v233_v55 = vadd.f32 %v447_v53, %v232_v54 }
 0x1a5   :  { %v542_v56 = vpop.f32.mrf.mxu1 }
 0x1a6   :  { %v236_v57 = vmax.f32 %v233_v55, 0.0 }
 0x1a8   :  { %576 = vmatmul.mubr.f32.vlgmr.msra.gmra.mxu0 %v236_v57 }
 0x268   :  { %v326_v62 = vpop.f32.mrf.mxu0 }
 0x269   :  { %v327_v63 = vadd.f32 %v448_v61, %v326_v62 }
 0x26a   :  { %v577_v1 = vpop.f32.mrf.mxu0 }
 0x26b   :  { %v330_v2 = vmax.f32 %v327_v63, 0.0 }
 0x26d   :  { %611 = vmatmul.mubr.f32.vlgmr.msra.gmra.mxu1 %v330_v2 }
 0x32d   :  { %v420_v4 = vpop.f32.mrf.mxu1 }
 0x32e   :  { %v421_v0 = vadd.f32 %v449_v3, %v420_v4 }
 0x32f   :  { %v612_v5 = vpop.f32.mrf.mxu1 }
 0x330   :  { %622 = vtanh.f32 %v421_v0 }
 0x33d   :  { %v623_v6 = vpop.eup %622 }
 0x33e   :  { %426 = vst.msk [vmem:[#allocation7] sm:$0xff] %vm425_vm2, %v623_v6 }
 0x33f   :  { %431 = vsyncadd [#allocation4], 96  ;;  %s696_s7 = smov [#allocation7]  }
 0x340   :  { %s432_s18 = sshll.u32 %s696_s7, 4  ;;  %s433_s18 = int_to_ptr.vmem [resolvable:$true] %s432_s18 }
 0x341   :  { %s664_s6 = scalar_lea.vmem %s433_s18, 32  ;;  %s668_s19 = scalar_lea.vmem %s433_s18, 128 }
 0x342   :  { %p665_p10 = scmp.ne.s32.totalorder %s433_s18, %s664_s6  ;;  %p669_p11 = scmp.lt.s32.totalorder %s433_s18, %s433_s18 }
 0x343   :  { %p670_p12 = scmp.lt.s32.totalorder %s668_s19, %s664_s6 }
 0x345   :  { %p671_p13 = por %p670_p12, %p669_p11 }
 0x347   :  { %p672_p0 = pnand %p671_p13, %p665_p10 }
 0x349   :  { %675 = shalt.err (!%p672_p0)
}
 0x34a   :  { %s697_s8 = smov 32   ;;  %s698_s20 = smov 2  }
 0x34b   :  { %438 = dma.vmem_to_hbm [thread:$0]  %s433_s18, 32, %s935_s9, [#allocation4], %s697_s8, %s697_s8, %s698_s20  }
 0x34c   :  { %688 = dma.done.wait [#allocation4], 128  }
 0x34d   :  { %689 = vsyncadd [#allocation4], 4294967168 }
 0x34e   :  { %442 = vsyncpa [#allocation3], 1 }
 0x34f   :  { %443 = vsyncpa [#allocation6], 1 }
 0x350   :  { %444 = vsyncpa [#allocation4], 1 }

</bundles_post_ra>
